<compile_context>
chip_gen: v7x
topology: tpu7x:2x2x1
jax: 0.10.0
libtpu: 0.0.40
codegen_flags: <defaults>
</compile_context>

<pallas_src>
import jax
import jax.numpy as jnp
from jax.experimental import pallas as pl
from jax.experimental.pallas import tpu as pltpu


def _round_up(x: int, m: int) -> int:
    return ((x + m - 1) // m) * m


def tdm_kernel(z_ref, t_ref, rho_ref, o_ref):
    # Compute in f32 regardless of input dtype (v5e has no bf16 VPU/EUP path).
    rho = rho_ref[...].astype(jnp.float32)          # (1, TD)
    t = t_ref[...].astype(jnp.float32)              # (TB, 1)
    # Reciprocal once on the (1, TD) row, then a broadcast multiply on the VPU.
    inv_rho = pl.reciprocal(rho + 1e-10, approx=False)
    decay = jnp.exp(-t * inv_rho)                   # (TB, TD) via broadcasting (EUP exp)
    o_ref[...] = (decay * z_ref[...].astype(jnp.float32)).astype(o_ref.dtype)


def tdm_forward(z, time, rho, *, tb_max=512, td_max=1024):
    B, D = z.shape
    assert time.shape == (B, 1)
    assert rho.shape == (1, D)

    # Sublane/lane-aligned tile sizes, capped for v7x's 64 MiB physical /
    # 32 MiB scoped VMEM (z + out double-buffered at (512,1024) f32 ~ 8 MiB).
    TB = min(tb_max, _round_up(B, 8))
    TD = min(td_max, _round_up(D, 128))
    Bp = _round_up(B, TB)
    Dp = _round_up(D, TD)

    # Pad to full tiles so every block is full and the output is lane-dense.
    # rho pads with 1.0 so padded lanes never generate inf/nan; z pads with 0.
    if (Bp, Dp) != (B, D):
        z_p = jnp.zeros((Bp, Dp), z.dtype).at[:B, :D].set(z)
        t_p = jnp.zeros((Bp, 1), time.dtype).at[:B, :].set(time)
        rho_p = jnp.ones((1, Dp), rho.dtype).at[:, :D].set(rho)
    else:
        z_p, t_p, rho_p = z, time, rho

    itemsize = jnp.dtype(z.dtype).itemsize
    out = pl.pallas_call(
        tdm_kernel,
        out_shape=jax.ShapeDtypeStruct((Bp, Dp), z.dtype),
        grid_spec=pl.GridSpec(
            grid=(Bp // TB, Dp // TD),
            in_specs=[
                pl.BlockSpec((TB, TD), lambda i, j: (i, j)),   # z
                pl.BlockSpec((TB, 1), lambda i, j: (i, 0)),    # time: resident across D
                pl.BlockSpec((1, TD), lambda i, j: (0, j)),    # rho: resident across B
            ],
            out_specs=pl.BlockSpec((TB, TD), lambda i, j: (i, j)),
        ),
        compiler_params=pltpu.CompilerParams(
            dimension_semantics=("parallel", "parallel"),
        ),
        cost_estimate=pl.CostEstimate(
            flops=2 * Bp * Dp,
            transcendentals=Bp * Dp,
            bytes_accessed=2 * Bp * Dp * itemsize + Bp * itemsize + Dp * itemsize,
        ),
    )(z_p, t_p, rho_p)

    if (Bp, Dp) != (B, D):
        out = out[:B, :D]
    return out


if __name__ == "__main__":
    key = jax.random.PRNGKey(0)
    kz, kt, kz2, kt2 = jax.random.split(key, 4)

    # Small shapes consistent with the module: batch=8, in_dimension=32.
    B, D = 8, 32
    z = jax.random.normal(kz, (B, D), dtype=jnp.float32)
    time = jax.random.uniform(kt, (B, 1), dtype=jnp.float32)
    rho = jnp.ones((1, D), dtype=jnp.float32)   # matches TDM._initialize_weights

    out = jax.block_until_ready(tdm_forward(z, time, rho))
    ref = jnp.exp(-time / (rho + 1e-10)) * z
    assert jnp.allclose(out, ref, atol=1e-5, rtol=1e-5), "mismatch vs reference (small)"

    # Second check with tiny tile caps to exercise the multi-tile grid path.
    B2, D2 = 16, 256
    z2 = jax.random.normal(kz2, (B2, D2), dtype=jnp.float32)
    time2 = jax.random.uniform(kt2, (B2, 1), dtype=jnp.float32)
    rho2 = jnp.ones((1, D2), dtype=jnp.float32)
    out2 = jax.block_until_ready(tdm_forward(z2, time2, rho2, tb_max=8, td_max=128))
    ref2 = jnp.exp(-time2 / (rho2 + 1e-10)) * z2
    assert jnp.allclose(out2, ref2, atol=1e-5, rtol=1e-5), "mismatch vs reference (tiled)"

    print("KERNEL_OK")
</pallas_src>

<mosaic_0001>
module attributes {stable_mosaic.version = 11 : i64} {
  func.func @tdm_kernel(%arg0: i32, %arg1: i32, %arg2: memref<8x128xf32, #tpu.memory_space<vmem>>, %arg3: memref<8x1xf32, #tpu.memory_space<vmem>>, %arg4: memref<1x128xf32, #tpu.memory_space<vmem>>, %arg5: memref<8x128xf32, #tpu.memory_space<vmem>>) attributes {dimension_semantics = [#tpu.dimension_semantics<parallel>, #tpu.dimension_semantics<parallel>], iteration_bounds = array<i64: 1, 1>, scalar_prefetch = 0 : i64, scratch_operands = 0 : i64, tpu.core_type = #tpu.core_type<tc>, window_params = [{transform_indices = @transform_0, window_bounds = array<i64: 8, 128>}, {transform_indices = @transform_1, window_bounds = array<i64: 8, 1>}, {transform_indices = @transform_2, window_bounds = array<i64: 1, 128>}, {transform_indices = @transform_3, window_bounds = array<i64: 8, 128>}]} {
    %c0 = arith.constant 0 : index
    %c0_0 = arith.constant 0 : index
    %0 = vector.load %arg4[%c0, %c0_0] : memref<1x128xf32, #tpu.memory_space<vmem>>, vector<1x128xf32>
    %c0_1 = arith.constant 0 : index
    %c0_2 = arith.constant 0 : index
    %1 = vector.load %arg3[%c0_1, %c0_2] : memref<8x1xf32, #tpu.memory_space<vmem>>, vector<8x1xf32>
    %cst = arith.constant 1.000000e-10 : f32
    %2 = vector.broadcast %cst : f32 to vector<1x128xf32>
    %3 = arith.addf %0, %2 : vector<1x128xf32>
    %4 = tpu.reciprocal %3 : vector<1x128xf32> -> vector<1x128xf32>
    %cst_3 = arith.constant 0.000000e+00 : f32
    %5 = vector.broadcast %cst_3 : f32 to vector<8x1xf32>
    %6 = arith.subf %5, %1 : vector<8x1xf32>
    %7 = vector.broadcast %6 : vector<8x1xf32> to vector<8x128xf32>
    %8 = vector.broadcast %4 : vector<1x128xf32> to vector<8x128xf32>
    %9 = arith.mulf %7, %8 : vector<8x128xf32>
    %10 = math.exp %9 : vector<8x128xf32>
    %c0_4 = arith.constant 0 : index
    %c0_5 = arith.constant 0 : index
    %11 = vector.load %arg2[%c0_4, %c0_5] : memref<8x128xf32, #tpu.memory_space<vmem>>, vector<8x128xf32>
    %12 = arith.mulf %10, %11 : vector<8x128xf32>
    %c0_6 = arith.constant 0 : index
    %c0_7 = arith.constant 0 : index
    %13 = vector.load %arg5[%c0_6, %c0_7] : memref<8x128xf32, #tpu.memory_space<vmem>>, vector<8x128xf32>
    tpu.vector_store %arg5[%c0_6, %c0_7], %12 {strides = array<i32>} : memref<8x128xf32, #tpu.memory_space<vmem>>, vector<8x128xf32>,
    return
  }
  func.func @transform_0(%arg0: i32, %arg1: i32) -> (i32, i32) {
    %c0_i32 = arith.constant 0 : i32
    return %arg0, %arg1 : i32, i32
  }
  func.func @transform_1(%arg0: i32, %arg1: i32) -> (i32, i32) {
    %c0_i32 = arith.constant 0 : i32
    %c0_i32_0 = arith.constant 0 : i32
    return %arg0, %c0_i32 : i32, i32
  }
  func.func @transform_2(%arg0: i32, %arg1: i32) -> (i32, i32) {
    %c0_i32 = arith.constant 0 : i32
    %c0_i32_0 = arith.constant 0 : i32
    return %c0_i32, %arg1 : i32, i32
  }
  func.func @transform_3(%arg0: i32, %arg1: i32) -> (i32, i32) {
    %c0_i32 = arith.constant 0 : i32
    return %arg0, %arg1 : i32, i32
  }
}

</mosaic_0001>

<bundles_post_ra>
// kernel: tpu_custom_call.1
= control target key start
LH: loop header
LB: loop body
LE: loop exit
PB: predicated region body
PF: predicated region fallthrough
CT: control target
= control target key end

     0   :  { %s125_s0 = inlined_call_operand.vmem [shape: f32[8,128], index: 0, kind: input, shape index: {}]   ;;  %s126_s1 = inlined_call_operand.vmem [shape: f32[8,1], index: 1, kind: input, shape index: {}]   ;;  %s127_s2 = inlined_call_operand.vmem [shape: f32[1,128], index: 2, kind: input, shape index: {}]   ;;  %s128_s3 = inlined_call_operand.hbm [shape: f32[8,128], index: 3, kind: output, shape index: {}]  }
   0x1   :  { %v16_v0 = vld [vmem:[%s126_s1] sm:$0xff] }
   0x2   :  { %8 = vsyncpa [#allocation3], 0  ;;  %v82_v1 = vmov 0   ;;  %v19_v2 = vsub.f32 0.0, %v16_v0  ;;  %v15_v3 = vld [vmem:[%s127_s2] sm:$0x1]  ;;  %v26_v5 = vlaneseq }
   0x3   :  { %53 = vset.pattern.permute.xlu0 %v82_v1  ;;  %v17_v4 = vadd.f32 1e-10, %v15_v3  ;;  %v34_v13 = vld [vmem:[%s125_s0] sm:$0xff]  ;;  %s83_s17 = smov [#allocation2]  }
   0x4   :  { %22 = vperm.xlu0 %53, %v19_v2   ;;  %v27_v6 = vshrl.u32 %v26_v5, 7  ;;  %s43_s18 = sshll.u32 %s83_s17, 4  ;;  %s44_s18 = int_to_ptr.vmem [resolvable:$true] %s43_s18 }
   0x5   :  { %54 = vrcp.f32 %v17_v4  ;;  %s58_s2 = scalar_lea.vmem %s44_s18, 128  ;;  %p63_p1 = scmp.lt.s32.totalorder %s44_s18, %s44_s18 }
   0x6   :  { %v28_v7 = vsub.s32 0, %v27_v6  ;;  %p59_p0 = scmp.ne.s32.totalorder %s44_s18, %s58_s2  ;;  %p64_p2 = scmp.lt.s32.totalorder %s58_s2, %s58_s2 }
   0x8   :  { %p65_p3 = por %p64_p2, %p63_p1 }
   0xa   :  { %p66_p4 = pnand %p65_p3, %p59_p0 }
   0xf   :  { %v55_v8 = vpop.eup %54 }
  0x10   :  { %v29_v9 = vrot.slane %v55_v8, %v28_v7 }
  0x83   :  { %v23_v10 = vpop.permute.xlu0 %22 }
  0x84   :  { %v31_v11 = vmul.f32 %v29_v9, %v23_v10 }
  0x86   :  { %v32_v12 = vmul.f32 1.442695, %v31_v11 }
  0x88   :  { %56 = vpow2.f32 %v32_v12 }
  0x92   :  { %v57_v14 = vpop.eup %56 }
  0x93   :  { %v35_v15 = vmul.f32 %v57_v14, %v34_v13 }
  0x95   :  { %36 = vst [vmem:[#allocation2] sm:$0xff] %v35_v15 }
  0x96   :  { %69 = shalt.err (!%p66_p4)
}
  0x97   :  { %s70_s21 = scalar_lea.hbm %s128_s3, 128 }
  0x98   :  { %p71_p5 = scmp.ne.s32.totalorder %s128_s3, %s70_s21  ;;  %p74_p6 = scmp.lt.u32.totalorder %s70_s21, %s128_s3 }
  0x9a   :  { %p76_p7 = pnand %p74_p6, %p71_p5 }
  0x9c   :  { %79 = shalt.err (!%p76_p7)
}
  0x9d   :  { %46 = dma.vmem_to_hbm [thread:$0]  %s44_s18, 128, %s128_s3, [#allocation3]  }
  0x9e   :  { %80 = dma.done.wait [#allocation3], 128  }
  0x9f   :  { %81 = vsyncadd [#allocation3], 4294967168 }
  0xa0   :  { %50 = vsyncpa [#allocation3], 1 }

</bundles_post_ra>
